<compile_context>
chip_gen: v7x
topology: tpu7x:2x2x1
jax: 0.10.0
libtpu: 0.0.40
codegen_flags: <defaults>
</compile_context>

<pallas_src>
import jax
import jax.numpy as jnp
from jax.experimental import pallas as pl
from jax.experimental.pallas import tpu as pltpu

IN_DIM = 146
HID_DIM = 64
OUT_DIM = 4


def _round_up(n, m):
    return ((n + m - 1) // m) * m


def _cdiv(a, b):
    return -(-a // b)


def mlp_kernel(x_ref, w0_ref, b0_ref, w1_ref, b1_ref, w2_ref, b2_ref, o_ref):
    # Fused hot path: 3 matmuls (bf16 operands on the MXU, f32 accumulation)
    # + f32 bias adds + f32 tanh (EUP), all on VMEM-resident tiles.
    x = x_ref[...]  # bf16 (tile_m, 146)
    h0 = jnp.tanh(
        jnp.dot(x, w0_ref[...], preferred_element_type=jnp.float32) + b0_ref[...]
    )  # f32 (tile_m, 64)
    h1 = jnp.tanh(
        jnp.dot(h0.astype(jnp.bfloat16), w1_ref[...],
                preferred_element_type=jnp.float32) + b1_ref[...]
    )  # f32 (tile_m, 64)
    h2 = jnp.tanh(
        jnp.dot(h1.astype(jnp.bfloat16), w2_ref[...],
                preferred_element_type=jnp.float32) + b2_ref[...]
    )  # f32 (tile_m, 4)
    o_ref[...] = h2.astype(o_ref.dtype)


def _x_block_spec(tile, num_tiles):
    # Deeper pipelining on the only streaming operand once the grid is long
    # enough to benefit; fall back to default double-buffering if this JAX
    # version does not expose pipeline_mode.
    if num_tiles >= 3:
        try:
            return pl.BlockSpec((tile, IN_DIM), lambda i: (i, 0),
                                pipeline_mode=pl.Buffered(3))
        except (TypeError, AttributeError):
            pass
    return pl.BlockSpec((tile, IN_DIM), lambda i: (i, 0))


def converted_model_forward(x, params, *, tile_m=1024):
    """x: (B, 146) float32. Returns (B, 4) float32."""
    w0, b0, w1, b1, w2, b2 = params
    B = x.shape[0]

    # --- choose the batch tile -------------------------------------------------
    if B <= tile_m:
        # Small-batch fast path: one block covering the whole (sublane-rounded)
        # batch -> grid of length 1, no pipeline machinery to pay for.
        tile = _round_up(max(B, 1), 8)
    else:
        # Large batch: big tile (multiple of 256), but keep >=4 grid steps so the
        # "parallel" batch axis balances across v7x's 2 TensorCores.
        tile = min(tile_m, max(256, _round_up(_cdiv(B, 4), 256)))
    padded_B = _round_up(B, tile)
    num_tiles = padded_B // tile

    # --- bf16 MXU operands; pad ragged batch with zero rows --------------------
    x_bf = x.astype(jnp.bfloat16)
    if padded_B != B:
        x_bf = jnp.pad(x_bf, ((0, padded_B - B), (0, 0)))
    w0_bf = w0.astype(jnp.bfloat16)
    w1_bf = w1.astype(jnp.bfloat16)
    w2_bf = w2.astype(jnp.bfloat16)
    # Biases stay f32 (post-matmul math is f32 everywhere, incl. v5e).

    full_map = lambda i: (0, 0)
    tile_map = lambda i: (i, 0)

    out = pl.pallas_call(
        mlp_kernel,
        out_shape=jax.ShapeDtypeStruct((padded_B, OUT_DIM), jnp.float32),
        grid_spec=pltpu.PrefetchScalarGridSpec(
            num_scalar_prefetch=0,
            grid=(num_tiles,),
            in_specs=[
                _x_block_spec(tile, num_tiles),               # x tile (streaming)
                pl.BlockSpec((IN_DIM, HID_DIM), full_map),    # W0 (resident)
                pl.BlockSpec((1, HID_DIM), full_map),         # b0
                pl.BlockSpec((HID_DIM, HID_DIM), full_map),   # W1
                pl.BlockSpec((1, HID_DIM), full_map),         # b1
                pl.BlockSpec((HID_DIM, OUT_DIM), full_map),   # W2
                pl.BlockSpec((1, OUT_DIM), full_map),         # b2
            ],
            out_specs=pl.BlockSpec((tile, OUT_DIM), tile_map),
        ),
        compiler_params=pltpu.CompilerParams(
            dimension_semantics=("parallel",),
        ),
    )(x_bf, w0_bf, b0, w1_bf, b1, w2_bf, b2)

    return out[:B]


def init_params(key):
    """Deterministic init mimicking PyTorch nn.Linear default (U[-1/sqrt(fan_in), +])."""
    def linear_init(k, fan_in, fan_out):
        kw, kb = jax.random.split(k)
        bound = 1.0 / jnp.sqrt(fan_in)
        # Stored as (in, out) so the kernel computes x @ W + b
        # (equivalent to PyTorch's x @ W.T + b with W stored (out, in)).
        w = jax.random.uniform(kw, (fan_in, fan_out), jnp.float32, -bound, bound)
        b = jax.random.uniform(kb, (1, fan_out), jnp.float32, -bound, bound)
        return w, b

    k0, k1, k2 = jax.random.split(key, 3)
    w0, b0 = linear_init(k0, IN_DIM, HID_DIM)
    w1, b1 = linear_init(k1, HID_DIM, HID_DIM)
    w2, b2 = linear_init(k2, HID_DIM, OUT_DIM)
    return (w0, b0, w1, b1, w2, b2)


def reference_forward(x, params):
    """Pure-JAX reference using the same bf16-operand / f32-accumulate math."""
    w0, b0, w1, b1, w2, b2 = params

    def mm(a, w):
        return jnp.dot(a.astype(jnp.bfloat16), w.astype(jnp.bfloat16),
                       preferred_element_type=jnp.float32)

    h = jnp.tanh(mm(x, w0) + b0)
    h = jnp.tanh(mm(h, w1) + b1)
    return jnp.tanh(mm(h, w2) + b2)


if __name__ == "__main__":
    key = jax.random.PRNGKey(0)
    kx, kp = jax.random.split(key)
    params = init_params(kp)

    # 1) Small batch: exercises the single-block fast path (grid=(1,)).
    B_small = 8
    x_small = jax.random.normal(kx, (B_small, IN_DIM), jnp.float32)
    out_small = jax.block_until_ready(converted_model_forward(x_small, params))
    ref_small = reference_forward(x_small, params)
    assert out_small.shape == (B_small, OUT_DIM)
    assert jnp.allclose(out_small, ref_small, atol=1e-2, rtol=1e-2), \
        "small-batch mismatch vs reference"

    # 2) Ragged batch: exercises cdiv + zero-padding + the multi-step tiled
    #    (and 3-deep buffered) pipeline path with tile_m=256 -> grid=(4,).
    B_big = 1000
    x_big = jax.random.normal(jax.random.PRNGKey(1), (B_big, IN_DIM), jnp.float32)
    out_big = jax.block_until_ready(
        converted_model_forward(x_big, params, tile_m=256))
    ref_big = reference_forward(x_big, params)
    assert out_big.shape == (B_big, OUT_DIM)
    assert jnp.allclose(out_big, ref_big, atol=1e-2, rtol=1e-2), \
        "tiled-batch mismatch vs reference"

    print("KERNEL_OK")
</pallas_src>

<mosaic_0001>
module attributes {stable_mosaic.version = 11 : i64} {
  func.func @mlp_kernel(%arg0: i32, %arg1: memref<8x146xbf16, #tpu.memory_space<vmem>>, %arg2: memref<146x64xbf16, #tpu.memory_space<vmem>>, %arg3: memref<1x64xf32, #tpu.memory_space<vmem>>, %arg4: memref<64x64xbf16, #tpu.memory_space<vmem>>, %arg5: memref<1x64xf32, #tpu.memory_space<vmem>>, %arg6: memref<64x4xbf16, #tpu.memory_space<vmem>>, %arg7: memref<1x4xf32, #tpu.memory_space<vmem>>, %arg8: memref<8x4xf32, #tpu.memory_space<vmem>>) attributes {dimension_semantics = [#tpu.dimension_semantics<parallel>], iteration_bounds = array<i64: 1>, scalar_prefetch = 0 : i64, scratch_operands = 0 : i64, tpu.core_type = #tpu.core_type<tc>, window_params = [{transform_indices = @transform_0, window_bounds = array<i64: 8, 146>}, {pipeline_mode = #tpu.pipeline_mode<synchronous>, transform_indices = @transform_1, window_bounds = array<i64: 146, 64>}, {pipeline_mode = #tpu.pipeline_mode<synchronous>, transform_indices = @transform_2, window_bounds = array<i64: 1, 64>}, {pipeline_mode = #tpu.pipeline_mode<synchronous>, transform_indices = @transform_3, window_bounds = array<i64: 64, 64>}, {pipeline_mode = #tpu.pipeline_mode<synchronous>, transform_indices = @transform_4, window_bounds = array<i64: 1, 64>}, {pipeline_mode = #tpu.pipeline_mode<synchronous>, transform_indices = @transform_5, window_bounds = array<i64: 64, 4>}, {pipeline_mode = #tpu.pipeline_mode<synchronous>, transform_indices = @transform_6, window_bounds = array<i64: 1, 4>}, {transform_indices = @transform_7, window_bounds = array<i64: 8, 4>}]} {
    %c0 = arith.constant 0 : index
    %c0_0 = arith.constant 0 : index
    %0 = vector.load %arg1[%c0, %c0_0] : memref<8x146xbf16, #tpu.memory_space<vmem>>, vector<8x146xbf16>
    %c0_1 = arith.constant 0 : index
    %c0_2 = arith.constant 0 : index
    %1 = vector.load %arg2[%c0_1, %c0_2] : memref<146x64xbf16, #tpu.memory_space<vmem>>, vector<146x64xbf16>
    %cst = arith.constant dense<0.000000e+00> : vector<8x64xf32>
    %2 = tpu.matmul %0, %1, %cst {dimension_numbers = #tpu.dot_dimension_numbers<[1], [0], [0], [1], [0, 0, 1, 1], [], []>} : vector<8x146xbf16>, vector<146x64xbf16>, vector<8x64xf32> -> vector<8x64xf32>
    %c0_3 = arith.constant 0 : index
    %c0_4 = arith.constant 0 : index
    %3 = vector.load %arg3[%c0_3, %c0_4] : memref<1x64xf32, #tpu.memory_space<vmem>>, vector<1x64xf32>
    %4 = vector.broadcast %3 : vector<1x64xf32> to vector<8x64xf32>
    %5 = arith.addf %2, %4 : vector<8x64xf32>
    %6 = math.tanh %5 : vector<8x64xf32>
    %7 = arith.truncf %6 : vector<8x64xf32> to vector<8x64xbf16>
    %c0_5 = arith.constant 0 : index
    %c0_6 = arith.constant 0 : index
    %8 = vector.load %arg4[%c0_5, %c0_6] : memref<64x64xbf16, #tpu.memory_space<vmem>>, vector<64x64xbf16>
    %cst_7 = arith.constant dense<0.000000e+00> : vector<8x64xf32>
    %9 = tpu.matmul %7, %8, %cst_7 {dimension_numbers = #tpu.dot_dimension_numbers<[1], [0], [0], [1], [0, 0, 1, 1], [], []>} : vector<8x64xbf16>, vector<64x64xbf16>, vector<8x64xf32> -> vector<8x64xf32>
    %c0_8 = arith.constant 0 : index
    %c0_9 = arith.constant 0 : index
    %10 = vector.load %arg5[%c0_8, %c0_9] : memref<1x64xf32, #tpu.memory_space<vmem>>, vector<1x64xf32>
    %11 = vector.broadcast %10 : vector<1x64xf32> to vector<8x64xf32>
    %12 = arith.addf %9, %11 : vector<8x64xf32>
    %13 = math.tanh %12 : vector<8x64xf32>
    %14 = arith.truncf %13 : vector<8x64xf32> to vector<8x64xbf16>
    %c0_10 = arith.constant 0 : index
    %c0_11 = arith.constant 0 : index
    %15 = vector.load %arg6[%c0_10, %c0_11] : memref<64x4xbf16, #tpu.memory_space<vmem>>, vector<64x4xbf16>
    %cst_12 = arith.constant dense<0.000000e+00> : vector<8x4xf32>
    %16 = tpu.matmul %14, %15, %cst_12 {dimension_numbers = #tpu.dot_dimension_numbers<[1], [0], [0], [1], [0, 0, 1, 1], [], []>} : vector<8x64xbf16>, vector<64x4xbf16>, vector<8x4xf32> -> vector<8x4xf32>
    %c0_13 = arith.constant 0 : index
    %c0_14 = arith.constant 0 : index
    %17 = vector.load %arg7[%c0_13, %c0_14] : memref<1x4xf32, #tpu.memory_space<vmem>>, vector<1x4xf32>
    %18 = vector.broadcast %17 : vector<1x4xf32> to vector<8x4xf32>
    %19 = arith.addf %16, %18 : vector<8x4xf32>
    %20 = math.tanh %19 : vector<8x4xf32>
    %c0_15 = arith.constant 0 : index
    %c0_16 = arith.constant 0 : index
    %21 = vector.load %arg8[%c0_15, %c0_16] : memref<8x4xf32, #tpu.memory_space<vmem>>, vector<8x4xf32>
    tpu.vector_store %arg8[%c0_15, %c0_16], %20 {strides = array<i32>} : memref<8x4xf32, #tpu.memory_space<vmem>>, vector<8x4xf32>,
    return
  }
  func.func @transform_0(%arg0: i32) -> (i32, i32) {
    %c0_i32 = arith.constant 0 : i32
    %c0_i32_0 = arith.constant 0 : i32
    return %arg0, %c0_i32 : i32, i32
  }
  func.func @transform_1(%arg0: i32) -> (i32, i32) {
    %c0_i32 = arith.constant 0 : i32
    %c0_i32_0 = arith.constant 0 : i32
    %c0_i32_1 = arith.constant 0 : i32
    return %c0_i32, %c0_i32_0 : i32, i32
  }
  func.func @transform_2(%arg0: i32) -> (i32, i32) {
    %c0_i32 = arith.constant 0 : i32
    %c0_i32_0 = arith.constant 0 : i32
    %c0_i32_1 = arith.constant 0 : i32
    return %c0_i32, %c0_i32_0 : i32, i32
  }
  func.func @transform_3(%arg0: i32) -> (i32, i32) {
    %c0_i32 = arith.constant 0 : i32
    %c0_i32_0 = arith.constant 0 : i32
    %c0_i32_1 = arith.constant 0 : i32
    return %c0_i32, %c0_i32_0 : i32, i32
  }
  func.func @transform_4(%arg0: i32) -> (i32, i32) {
    %c0_i32 = arith.constant 0 : i32
    %c0_i32_0 = arith.constant 0 : i32
    %c0_i32_1 = arith.constant 0 : i32
    return %c0_i32, %c0_i32_0 : i32, i32
  }
  func.func @transform_5(%arg0: i32) -> (i32, i32) {
    %c0_i32 = arith.constant 0 : i32
    %c0_i32_0 = arith.constant 0 : i32
    %c0_i32_1 = arith.constant 0 : i32
    return %c0_i32, %c0_i32_0 : i32, i32
  }
  func.func @transform_6(%arg0: i32) -> (i32, i32) {
    %c0_i32 = arith.constant 0 : i32
    %c0_i32_0 = arith.constant 0 : i32
    %c0_i32_1 = arith.constant 0 : i32
    return %c0_i32, %c0_i32_0 : i32, i32
  }
  func.func @transform_7(%arg0: i32) -> (i32, i32) {
    %c0_i32 = arith.constant 0 : i32
    %c0_i32_0 = arith.constant 0 : i32
    return %arg0, %c0_i32 : i32, i32
  }
}

</mosaic_0001>

<bundles_post_ra>
// kernel: tpu_custom_call.1
= control target key start
LH: loop header
LB: loop body
LE: loop exit
PB: predicated region body
PF: predicated region fallthrough
CT: control target
= control target key end

     0   :  { %v430_v0 = vmov 0   ;;  %vm117_vm0 = vcmask 146432   ;;  %vm121_vm1 = vcmask 1040384   ;;  %v431_v16 = vmov 0.0   ;;  %s544_s1 = inlined_call_operand.vmem [shape: bf16[146,64], index: 1, kind: input, shape index: {}]   ;;  %s545_s0 = inlined_call_operand.vmem [shape: bf16[8,146], index: 0, kind: input, shape index: {}]   ;;  %s546_s3 = inlined_call_operand.vmem [shape: bf16[64,64], index: 3, kind: input, shape index: {}]   ;;  %s547_s2 = inlined_call_operand.vmem [shape: f32[1,64], index: 2, kind: input, shape index: {}]   ;;  %s548_s5 = inlined_call_operand.vmem [shape: bf16[64,4], index: 5, kind: input, shape index: {}]   ;;  %s549_s4 = inlined_call_operand.vmem [shape: f32[1,64], index: 4, kind: input, shape index: {}]   ;;  %s550_s6 = inlined_call_operand.vmem [shape: f32[1,4], index: 6, kind: input, shape index: {}]   ;;  %s551_s7 = inlined_call_operand.vmem [shape: f32[8,4], index: 7, kind: output, shape index: {}]  }
   0x1   :  { %125 = vmatprep.subr.bf16.mxu0 %v430_v0  ;;  %v404_v1 = vld [vmem:[%s544_s1] sm:$0xff]   ;;  %v405_v2 = vld [vmem:[%s544_s1 + $0x8] sm:$0xff]   ;;  %v406_v3 = vld [vmem:[%s544_s1 + $0x10] sm:$0xff]   ;;  %377 = vmatprep.subr.bf16.mxu1 %v431_v16  ;;  %vm432_vm2 = vmmov 0   ;;  %vm206_vm3 = vcmask 523264   ;;  %vm335_vm4 = vcmask 31744  }
   0x2   :  { %126 = vmatpush1.bf16.msra.mxu0 %v404_v1  ;;  %v27_v4 = vld [vmem:[%s545_s0] sm:$0xff]  ;;  %v407_v5 = vld [vmem:[%s544_s1 + $0x18] sm:$0xff]   ;;  %v409_v8 = vld [vmem:[%s544_s1 + $0x28] sm:$0xff]   ;;  %385 = vmatprep.mubr.msk.bf16.mxu1 %vm432_vm2, %v431_v16 }
   0x3   :  { %127 = vmatprep.subr.bf16.mxu0 %v430_v0  ;;  %v343_v6 = vcombine.high %v27_v4, %v27_v4  ;;  %v408_v7 = vld [vmem:[%s544_s1 + $0x20] sm:$0xff]   ;;  %v410_v9 = vld [vmem:[%s544_s1 + $0x30] sm:$0xff]   ;;  %v411_v10 = vld [vmem:[%s544_s1 + $0x38] sm:$0xff]   ;;  %v342_v14 = vcombine.low %v27_v4, %v27_v4 }
   0x4   :  { %v412_v11 = vld [vmem:[%s544_s1 + $0x40] sm:$0xff]   ;;  %v413_v12 = vld [vmem:[%s544_s1 + $0x48] ss:$0 sps:$4 sm:$0x11]   ;;  %v418_v18 = vld [vmem:[%s546_s3 + $0x10] sm:$0xff]  }
   0x5   :  { %354 = vmatprep.mubr.msk.bf16.mxu0 %vm117_vm0, %v343_v6  ;;  %v123_v13 = vsel %vm121_vm1, %v413_v12, 0  ;;  %v416_v15 = vld [vmem:[%s546_s3] sm:$0xff]   ;;  %v417_v17 = vld [vmem:[%s546_s3 + $0x8] sm:$0xff]   ;;  %v419_v19 = vld [vmem:[%s546_s3 + $0x18] sm:$0xff]  }
   0x6   :  { %128 = vmatpush1.bf16.msra.mxu0 %v405_v2  ;;  %378 = vmatpush3.bf16.msra.mxu1 %v416_v15  ;;  %v341_v20 = vld [vmem:[%s547_s2] ss:$0 sm:$0xff]  ;;  %v421_v29 = vld [vmem:[%s548_s5 + $0x8] sm:$0xff]   ;;  %v422_v30 = vld [vmem:[%s548_s5 + $0x10] sm:$0xff]  }
   0x7   :  { %129 = vmatprep.subr.bf16.mxu0 %v430_v0  ;;  %379 = vmatprep.subr.bf16.mxu1 %v431_v16  ;;  %v420_v28 = vld [vmem:[%s548_s5] sm:$0xff]   ;;  %v423_v31 = vld [vmem:[%s548_s5 + $0x18] sm:$0xff]  }
   0x8   :  { %v355_v32 = vld [vmem:[%s549_s4] ss:$0 sm:$0xff] }
   0x9   :  { %v361_v40 = vld [vmem:[%s550_s6] ss:$0 sm:$0xff] }
   0xa   :  { %130 = vmatpush1.bf16.msra.mxu0 %v406_v3  ;;  %380 = vmatpush3.bf16.msra.mxu1 %v417_v17 }
   0xb   :  { %131 = vmatprep.subr.bf16.mxu0 %v430_v0  ;;  %381 = vmatprep.subr.bf16.mxu1 %v431_v16 }
   0xe   :  { %132 = vmatpush1.bf16.msra.mxu0 %v407_v5  ;;  %382 = vmatpush3.bf16.msra.mxu1 %v418_v18 }
   0xf   :  { %133 = vmatprep.subr.bf16.mxu0 %v430_v0  ;;  %383 = vmatprep.subr.bf16.mxu1 %v431_v16 }
  0x12   :  { %134 = vmatpush1.bf16.msra.mxu0 %v408_v7  ;;  %384 = vmatpush3.bf16.msra.mxu1 %v419_v19 }
  0x13   :  { %135 = vmatprep.subr.bf16.mxu0 %v430_v0  ;;  %389 = vmatprep.subr.bf16.mxu1 %v431_v16 }
  0x16   :  { %136 = vmatpush1.bf16.msra.mxu0 %v409_v8 }
  0x17   :  { %137 = vmatprep.subr.bf16.mxu0 %v430_v0 }
  0x1a   :  { %138 = vmatpush1.bf16.msra.mxu0 %v410_v9 }
  0x1b   :  { %139 = vmatprep.subr.bf16.mxu0 %v430_v0 }
  0x1e   :  { %140 = vmatpush1.bf16.msra.mxu0 %v411_v10 }
  0x1f   :  { %141 = vmatprep.subr.bf16.mxu0 %v430_v0 }
  0x22   :  { %142 = vmatpush1.bf16.msra.mxu0 %v412_v11 }
  0x23   :  { %143 = vmatprep.subr.bf16.mxu0 %v430_v0 }
  0x26   :  { %144 = vmatpush1.bf16.msra.mxu0 %v123_v13 }
  0x29   :  { %158 = vmatmul.mubr.bf16.vlgmr.msra.gmra.mrb[0].mxu0 %v342_v14 }
  0xfc   :  { %v159_v21 = vpop.f32.mrb[0].mxu0 }
  0xfd   :  { %v160_v22 = vadd.f32 %v341_v20, %v159_v21  ;;  %v161_v23 = vpop.f32.mrb[1].mxu0 }
  0xfe   :  { %v162_v24 = vpop.f32.mrb[2].mxu0 }
  0xff   :  { %424 = vtanh.f32 %v160_v22  ;;  %v163_v25 = vpop.f32.mrb[3].mxu0 }
 0x109   :  { %v425_v26 = vpop.eup %424 }
 0x10a   :  { %v166_v27 = vpack.c.bf16 %v425_v26, %v425_v26 }
 0x10c   :  { %386 = vmatmul.mubr.msk.bf16.vlgmr.msra.gmra.mrb[0].mxu1 %vm206_vm3, %v166_v27 }
 0x10d   :  { %397 = vmatprep.mubr.msk.bf16.mxu1 %vm432_vm2, %v431_v16  ;;  %390 = vmatpush3.bf16.msra.mxu1 %v420_v28 }
 0x10e   :  { %391 = vmatprep.subr.bf16.mxu1 %v431_v16 }
 0x111   :  { %392 = vmatpush3.bf16.msra.mxu1 %v421_v29 }
 0x112   :  { %393 = vmatprep.subr.bf16.mxu1 %v431_v16 }
 0x115   :  { %394 = vmatpush3.bf16.msra.mxu1 %v422_v30 }
 0x116   :  { %395 = vmatprep.subr.bf16.mxu1 %v431_v16 }
 0x119   :  { %396 = vmatpush3.bf16.msra.mxu1 %v423_v31 }
 0x1df   :  { %v244_v33 = vpop.f32.mrb[0].mxu1 }
 0x1e0   :  { %v245_v34 = vadd.f32 %v355_v32, %v244_v33  ;;  %v387_v35 = vpop.f32.mrb[1].mxu1 }
 0x1e1   :  { %v247_v36 = vpop.f32.mrb[2].mxu1 }
 0x1e2   :  { %426 = vtanh.f32 %v245_v34  ;;  %v388_v37 = vpop.f32.mrb[3].mxu1 }
 0x1ec   :  { %v427_v38 = vpop.eup %426 }
 0x1ed   :  { %v251_v39 = vpack.c.bf16 %v427_v38, %v427_v38 }
 0x1ef   :  { %398 = vmatmul.mubr.msk.bf16.vlgmr.msra.gmra.mrb[4].mxu1 %vm206_vm3, %v251_v39 }
 0x2c2   :  { %v328_v41 = vpop.f32.mrb[4].mxu1 }
 0x2c3   :  { %v329_v42 = vadd.f32 %v361_v40, %v328_v41  ;;  %v399_v43 = vpop.f32.mrb[5].mxu1 }
 0x2c4   :  { %v331_v44 = vpop.f32.mrb[6].mxu1 }
 0x2c5   :  { %428 = vtanh.f32 %v329_v42  ;;  %v400_v45 = vpop.f32.mrb[7].mxu1 }
 0x2cf   :  { %v429_v46 = vpop.eup %428 }
 0x2d0   :  { %336 = vst.msk [vmem:[%s551_s7] sm:$0xff] %vm335_vm4, %v429_v46 }

</bundles_post_ra>
